<compile_context>
chip_gen: v7x
topology: tpu7x:2x2x1
jax: 0.10.0
libtpu: 0.0.40
codegen_flags: <defaults>
</compile_context>

<pallas_src>
import functools

import jax
import jax.numpy as jnp
from jax.experimental import pallas as pl
from jax.experimental.pallas import tpu as pltpu


def _round_up(x, m):
    return ((x + m - 1) // m) * m


def _actor_kernel(xt_ref, w1_ref, w2_ref, wh_ref, b_ref, out_ref):
    """One batch-tile of the Actor forward pass (batch on the lane axis).

    xt_ref : (in_dim, TM)   activations, batch on lanes
    w1_ref : (H, in_dim)
    w2_ref : (H, H)
    wh_ref : (2, H)          fused [mean; log_std] head weights
    b_ref  : (H, 3)          col0 = b1, col1 = b2, col2[0:2] = [bm, bs]
    out_ref: (2, TM)         row0 = mean, row1 = log_std
    """
    b = b_ref[...]  # tiny, single VMEM load

    # Hidden layer 1: Linear + ReLU (f32 accumulation on the MXU).
    h = jnp.dot(w1_ref[...], xt_ref[...], preferred_element_type=jnp.float32)
    h = jnp.maximum(h + b[:, 0:1], 0.0)

    # Hidden layer 2: Linear + ReLU.
    h = jnp.dot(w2_ref[...], h, preferred_element_type=jnp.float32)
    h = jnp.maximum(h + b[:, 1:2], 0.0)

    # Fused mean / log_std heads: one matmul, one lane-dense store.
    heads = jnp.dot(wh_ref[...], h, preferred_element_type=jnp.float32)
    out_ref[...] = (heads + b[0:2, 2:3]).astype(out_ref.dtype)


def _actor_pallas(x, params):
    B, in_dim = x.shape
    H = params["w1"].shape[1]

    # --- host-side packing (one fused pass around the kernel launch) -------
    w1t = params["w1"].T                                            # (H, in_dim)
    w2t = params["w2"].T                                            # (H, H)
    wht = jnp.concatenate([params["wm"], params["ws"]], axis=1).T   # (2, H)
    bh = jnp.concatenate([params["bm"], params["bs"]], axis=0)      # (2, 1)
    b_all = jnp.concatenate(
        [params["b1"].T, params["b2"].T, jnp.pad(bh, ((0, H - 2), (0, 0)))],
        axis=1)                                                     # (H, 3)

    # --- batch tiling: batch on the lane axis -------------------------------
    TM_CAP = 2048                          # >=2 tiles (v7x megacore) once B > 2048
    b128 = _round_up(max(B, 1), 128)
    n_tiles = -(-b128 // TM_CAP)
    TM = _round_up(-(-b128 // n_tiles), 128)   # balanced tile, multiple of 128
    B_pad = n_tiles * TM                       # pad bounded by ~128 rows per tile

    xt = x.T                                                        # (in_dim, B)
    if B_pad != B:
        xt = jnp.pad(xt, ((0, 0), (0, B_pad - B)))

    out = pl.pallas_call(
        _actor_kernel,
        out_shape=jax.ShapeDtypeStruct((2, B_pad), jnp.float32),
        grid=(n_tiles,),
        in_specs=[
            pl.BlockSpec((in_dim, TM), lambda i: (0, i)),   # x^T: tiled over batch lanes
            pl.BlockSpec((H, in_dim), lambda i: (0, 0)),    # W1^T: VMEM-resident
            pl.BlockSpec((H, H),      lambda i: (0, 0)),    # W2^T: VMEM-resident
            pl.BlockSpec((2, H),      lambda i: (0, 0)),    # fused head weights
            pl.BlockSpec((H, 3),      lambda i: (0, 0)),    # packed biases
        ],
        out_specs=pl.BlockSpec((2, TM), lambda i: (0, i)),  # lane-dense output slab
        compiler_params=pltpu.CompilerParams(
            dimension_semantics=("parallel",)),
    )(xt, w1t, w2t, wht, b_all)

    mean = out[0, :B][:, None]
    log_std = out[1, :B][:, None]
    return mean, log_std


def actor_forward_ref(x, p):
    """Pure-JAX reference (mirrors the PyTorch forward)."""
    h = jnp.maximum(x @ p["w1"] + p["b1"], 0.0)
    h = jnp.maximum(h @ p["w2"] + p["b2"], 0.0)
    mean = h @ p["wm"] + p["bm"]
    log_std = h @ p["ws"] + p["bs"]
    return mean, log_std


@functools.partial(jax.jit, static_argnames=("force_pallas",))
def actor_forward(x, params, force_pallas=False):
    """Actor forward pass: returns (mean, log_std), each (B, 1) float32.

    Small batches (< 1024 rows) use the fused pure-JAX path unless
    force_pallas=True: at those sizes a kernel is pure launch/DMA overhead.
    """
    if force_pallas or x.shape[0] >= 1024:
        return _actor_pallas(x, params)
    return actor_forward_ref(x, params)


def init_params(key, input_dim, hidden_size):
    """Deterministic synthetic parameters (Actor.__init__ with hidden_layers=2,
    output_dim forced to 1). Stored as (in, out) so y = x @ W + b."""
    ks = jax.random.split(key, 8)
    scale = 0.1
    return {
        # layers[0]: Linear(input_dim, hidden_size)
        "w1": scale * jax.random.normal(ks[0], (input_dim, hidden_size), jnp.float32),
        "b1": scale * jax.random.normal(ks[1], (1, hidden_size), jnp.float32),
        # layers[1]: Linear(hidden_size, hidden_size)
        "w2": scale * jax.random.normal(ks[2], (hidden_size, hidden_size), jnp.float32),
        "b2": scale * jax.random.normal(ks[3], (1, hidden_size), jnp.float32),
        # mean_output: Linear(hidden_size, 1)
        "wm": scale * jax.random.normal(ks[4], (hidden_size, 1), jnp.float32),
        "bm": scale * jax.random.normal(ks[5], (1, 1), jnp.float32),
        # log_std_output: Linear(hidden_size, 1)
        "ws": scale * jax.random.normal(ks[6], (hidden_size, 1), jnp.float32),
        "bs": scale * jax.random.normal(ks[7], (1, 1), jnp.float32),
    }


if __name__ == "__main__":
    key = jax.random.PRNGKey(0)
    k_param, k_x, k_x2 = jax.random.split(key, 3)

    batch = 8
    input_dim = 16    # state dimension
    hidden_size = 32  # hidden_layers = 2

    params = init_params(k_param, input_dim, hidden_size)
    x = jax.random.normal(k_x, (batch, input_dim), jnp.float32)

    # Run the Pallas kernel (forced, since batch is tiny) and verify.
    mean, log_std = actor_forward(x, params, force_pallas=True)
    mean, log_std = jax.block_until_ready((mean, log_std))
    mean_ref, log_std_ref = actor_forward_ref(x, params)
    assert mean.shape == (batch, 1) and log_std.shape == (batch, 1)
    assert jnp.allclose(mean, mean_ref, atol=1e-5, rtol=1e-5)
    assert jnp.allclose(log_std, log_std_ref, atol=1e-5, rtol=1e-5)

    # Also exercise the padded path (B not a multiple of 128) through the kernel.
    batch2 = 300
    x2 = jax.random.normal(k_x2, (batch2, input_dim), jnp.float32)
    mean2, log_std2 = jax.block_until_ready(
        actor_forward(x2, params, force_pallas=True))
    mean2_ref, log_std2_ref = actor_forward_ref(x2, params)
    assert jnp.allclose(mean2, mean2_ref, atol=1e-5, rtol=1e-5)
    assert jnp.allclose(log_std2, log_std2_ref, atol=1e-5, rtol=1e-5)

    print("KERNEL_OK")
</pallas_src>

<mosaic_0001>
module attributes {stable_mosaic.version = 11 : i64} {
  func.func @_actor_kernel(%arg0: i32, %arg1: memref<16x128xf32, #tpu.memory_space<vmem>>, %arg2: memref<32x16xf32, #tpu.memory_space<vmem>>, %arg3: memref<32x32xf32, #tpu.memory_space<vmem>>, %arg4: memref<2x32xf32, #tpu.memory_space<vmem>>, %arg5: memref<32x3xf32, #tpu.memory_space<vmem>>, %arg6: memref<2x128xf32, #tpu.memory_space<vmem>>) attributes {dimension_semantics = [#tpu.dimension_semantics<parallel>], iteration_bounds = array<i64: 1>, scalar_prefetch = 0 : i64, scratch_operands = 0 : i64, tpu.core_type = #tpu.core_type<tc>, window_params = [{transform_indices = @transform_0, window_bounds = array<i64: 16, 128>}, {pipeline_mode = #tpu.pipeline_mode<synchronous>, transform_indices = @transform_1, window_bounds = array<i64: 32, 16>}, {pipeline_mode = #tpu.pipeline_mode<synchronous>, transform_indices = @transform_2, window_bounds = array<i64: 32, 32>}, {pipeline_mode = #tpu.pipeline_mode<synchronous>, transform_indices = @transform_3, window_bounds = array<i64: 2, 32>}, {pipeline_mode = #tpu.pipeline_mode<synchronous>, transform_indices = @transform_4, window_bounds = array<i64: 32, 3>}, {transform_indices = @transform_5, window_bounds = array<i64: 2, 128>}]} {
    %c0 = arith.constant 0 : index
    %c0_0 = arith.constant 0 : index
    %0 = vector.load %arg5[%c0, %c0_0] : memref<32x3xf32, #tpu.memory_space<vmem>>, vector<32x3xf32>
    %c0_1 = arith.constant 0 : index
    %c0_2 = arith.constant 0 : index
    %1 = vector.load %arg2[%c0_1, %c0_2] : memref<32x16xf32, #tpu.memory_space<vmem>>, vector<32x16xf32>
    %c0_3 = arith.constant 0 : index
    %c0_4 = arith.constant 0 : index
    %2 = vector.load %arg1[%c0_3, %c0_4] : memref<16x128xf32, #tpu.memory_space<vmem>>, vector<16x128xf32>
    %cst = arith.constant dense<0.000000e+00> : vector<32x128xf32>
    %3 = tpu.matmul %1, %2, %cst {dimension_numbers = #tpu.dot_dimension_numbers<[1], [0], [0], [1], [0, 0, 1, 1], [], []>} : vector<32x16xf32>, vector<16x128xf32>, vector<32x128xf32> -> vector<32x128xf32>
    %4 = vector.extract_strided_slice %0 {offsets = [0, 0], sizes = [32, 1], strides = [1, 1]} : vector<32x3xf32> to vector<32x1xf32>
    %5 = vector.broadcast %4 : vector<32x1xf32> to vector<32x128xf32>
    %6 = arith.addf %3, %5 : vector<32x128xf32>
    %cst_5 = arith.constant 0.000000e+00 : f32
    %7 = vector.broadcast %cst_5 : f32 to vector<32x128xf32>
    %8 = arith.maximumf %6, %7 : vector<32x128xf32>
    %c0_6 = arith.constant 0 : index
    %c0_7 = arith.constant 0 : index
    %9 = vector.load %arg3[%c0_6, %c0_7] : memref<32x32xf32, #tpu.memory_space<vmem>>, vector<32x32xf32>
    %cst_8 = arith.constant dense<0.000000e+00> : vector<32x128xf32>
    %10 = tpu.matmul %9, %8, %cst_8 {dimension_numbers = #tpu.dot_dimension_numbers<[1], [0], [0], [1], [0, 0, 1, 1], [], []>} : vector<32x32xf32>, vector<32x128xf32>, vector<32x128xf32> -> vector<32x128xf32>
    %11 = vector.extract_strided_slice %0 {offsets = [0, 1], sizes = [32, 1], strides = [1, 1]} : vector<32x3xf32> to vector<32x1xf32>
    %12 = vector.broadcast %11 : vector<32x1xf32> to vector<32x128xf32>
    %13 = arith.addf %10, %12 : vector<32x128xf32>
    %cst_9 = arith.constant 0.000000e+00 : f32
    %14 = vector.broadcast %cst_9 : f32 to vector<32x128xf32>
    %15 = arith.maximumf %13, %14 : vector<32x128xf32>
    %c0_10 = arith.constant 0 : index
    %c0_11 = arith.constant 0 : index
    %16 = vector.load %arg4[%c0_10, %c0_11] : memref<2x32xf32, #tpu.memory_space<vmem>>, vector<2x32xf32>
    %cst_12 = arith.constant dense<0.000000e+00> : vector<2x128xf32>
    %17 = tpu.matmul %16, %15, %cst_12 {dimension_numbers = #tpu.dot_dimension_numbers<[1], [0], [0], [1], [0, 0, 1, 1], [], []>} : vector<2x32xf32>, vector<32x128xf32>, vector<2x128xf32> -> vector<2x128xf32>
    %18 = vector.extract_strided_slice %0 {offsets = [0, 2], sizes = [2, 1], strides = [1, 1]} : vector<32x3xf32> to vector<2x1xf32>
    %19 = vector.broadcast %18 : vector<2x1xf32> to vector<2x128xf32>
    %20 = arith.addf %17, %19 : vector<2x128xf32>
    %c0_13 = arith.constant 0 : index
    %c0_14 = arith.constant 0 : index
    %21 = vector.load %arg6[%c0_13, %c0_14] : memref<2x128xf32, #tpu.memory_space<vmem>>, vector<2x128xf32>
    tpu.vector_store %arg6[%c0_13, %c0_14], %20 {strides = array<i32>} : memref<2x128xf32, #tpu.memory_space<vmem>>, vector<2x128xf32>,
    return
  }
  func.func @transform_0(%arg0: i32) -> (i32, i32) {
    %c0_i32 = arith.constant 0 : i32
    %c0_i32_0 = arith.constant 0 : i32
    return %c0_i32, %arg0 : i32, i32
  }
  func.func @transform_1(%arg0: i32) -> (i32, i32) {
    %c0_i32 = arith.constant 0 : i32
    %c0_i32_0 = arith.constant 0 : i32
    %c0_i32_1 = arith.constant 0 : i32
    return %c0_i32, %c0_i32_0 : i32, i32
  }
  func.func @transform_2(%arg0: i32) -> (i32, i32) {
    %c0_i32 = arith.constant 0 : i32
    %c0_i32_0 = arith.constant 0 : i32
    %c0_i32_1 = arith.constant 0 : i32
    return %c0_i32, %c0_i32_0 : i32, i32
  }
  func.func @transform_3(%arg0: i32) -> (i32, i32) {
    %c0_i32 = arith.constant 0 : i32
    %c0_i32_0 = arith.constant 0 : i32
    %c0_i32_1 = arith.constant 0 : i32
    return %c0_i32, %c0_i32_0 : i32, i32
  }
  func.func @transform_4(%arg0: i32) -> (i32, i32) {
    %c0_i32 = arith.constant 0 : i32
    %c0_i32_0 = arith.constant 0 : i32
    %c0_i32_1 = arith.constant 0 : i32
    return %c0_i32, %c0_i32_0 : i32, i32
  }
  func.func @transform_5(%arg0: i32) -> (i32, i32) {
    %c0_i32 = arith.constant 0 : i32
    %c0_i32_0 = arith.constant 0 : i32
    return %c0_i32, %arg0 : i32, i32
  }
}

</mosaic_0001>

<bundles_post_ra>
// kernel: actor_forward.1
= control target key start
LH: loop header
LB: loop body
LE: loop exit
PB: predicated region body
PF: predicated region fallthrough
CT: control target
= control target key end

     0   :  { %vm50_vm0 = vcmask 130048   ;;  %v450_v3 = vmov 0   ;;  %vm172_vm1 = vcmask 261120   ;;  %v451_v13 = vmov 1   ;;  %s543_s0 = inlined_call_operand.vmem [shape: f32[16,128], index: 0, kind: input, shape index: {}]   ;;  %s544_s1 = inlined_call_operand.vmem [shape: f32[32,16], index: 1, kind: input, shape index: {}]   ;;  %s545_s4 = inlined_call_operand.vmem [shape: f32[32,3], index: 4, kind: input, shape index: {}]   ;;  %s546_s2 = inlined_call_operand.vmem [shape: f32[32,32], index: 2, kind: input, shape index: {}]   ;;  %s547_s3 = inlined_call_operand.vmem [shape: f32[2,32], index: 3, kind: input, shape index: {}]   ;;  %s548_s5 = inlined_call_operand.vmem [shape: f32[2,128], index: 5, kind: output, shape index: {}]  }
   0x1   :  { %v28_v0 = vld [vmem:[%s543_s0] sm:$0xff]  ;;  %v29_v1 = vld [vmem:[%s543_s0 + $0x8] sm:$0xff]  ;;  %444 = vset.pattern.permute.xlu0 %v450_v3  ;;  %445 = vset.pattern.permute.xlu1 %v450_v3  ;;  %v22_v6 = vld [vmem:[%s545_s4 + $0x10] sm:$0xff]  ;;  %v452_v35 = vmov 0.0|0.0   ;;  %vm453_vm2 = vmmov 0   ;;  %v454_v36 = vmov 0.0  }
   0x2   :  { %v24_v2 = vld [vmem:[%s544_s1] sm:$0xff]  ;;  %v420_v4 = vpack.c.bf16 %v29_v1, %v28_v0  ;;  %v25_v7 = vld [vmem:[%s544_s1 + $0x8] sm:$0xff]  ;;  %42 = vperm.xlu1 %445, %v22_v6   ;;  %v26_v9 = vld [vmem:[%s544_s1 + $0x10] sm:$0xff]  ;;  %v455_v37 = vmov 2  }
   0x3   :  { %389 = vmatprep.mubr.msk.f32.mxu0 %vm50_vm0, %v24_v2  ;;  %v20_v5 = vld [vmem:[%s545_s4] sm:$0xff]  ;;  %v21_v8 = vld [vmem:[%s545_s4 + $0x8] sm:$0xff]  ;;  %v23_v10 = vld [vmem:[%s545_s4 + $0x18] sm:$0xff] }
   0x4   :  { %421 = vmatprep.subr.bf16.mxu0 %v420_v4  ;;  %32 = vperm.xlu0 %444, %v20_v5   ;;  %v27_v11 = vld [vmem:[%s544_s1 + $0x18] sm:$0xff]  ;;  %v152_v12 = vld [vmem:[%s546_s2] sm:$0xff]  ;;  %v153_v32 = vld [vmem:[%s546_s2 + $0x8] sm:$0xff] }
   0x5   :  { %423 = vmatpush3.bf16.msra.mxu0 %v420_v4  ;;  %403 = vmatprep.mubr.msk.f32.mxu1 %vm172_vm1, %v152_v12  ;;  %v154_v33 = vld [vmem:[%s546_s2 + $0x10] sm:$0xff]  ;;  %v155_v34 = vld [vmem:[%s546_s2 + $0x18] sm:$0xff]  ;;  %v274_v56 = vld [vmem:[%s547_s3] sm:$0x3] }
   0x6   :  { %47 = vperm.xlu1 %445, %v23_v10   ;;  %432 = vmatprep.subr.bf16.mxu0 %v452_v35 }
   0x8   :  { %390 = vmatmul.mubr.msk.f32.vlgmr.msra.gmra.mrb[0].mxu0 %vm50_vm0, %v25_v7  ;;  %37 = vperm.xlu0 %444, %v21_v8  }
   0x9   :  { %392 = vmatprep.mubr.msk.f32.mxu0 %vm50_vm0, %v26_v9 }
   0xa   :  { %447 = vset.pattern.permute.xlu1 %v451_v13 }
   0xb   :  { %161 = vperm.xlu1 %447, %v21_v8  }
   0xc   :  { %393 = vmatmul.mubr.msk.f32.gmra.mrb[2].mxu0 %vm50_vm0, %v27_v11  ;;  %446 = vset.pattern.permute.xlu0 %v451_v13 }
   0xd   :  { %157 = vperm.xlu0 %446, %v20_v5   ;;  %417 = vmatprep.mubr.msk.f32.mxu0 %vm453_vm2, %v454_v36 }
   0xf   :  { %165 = vperm.xlu1 %447, %v22_v6  }
  0x11   :  { %169 = vperm.xlu0 %446, %v23_v10  }
  0x13   :  { %448 = vset.pattern.permute.xlu1 %v455_v37 }
  0x14   :  { %276 = vperm.xlu1 %448, %v20_v5  }
  0x15   :  { %449 = vset.pattern.permute.xlu0 %v455_v37 }
  0x81   :  { %v43_v15 = vpop.permute.xlu1 %42 }
  0x83   :  { %v33_v14 = vpop.permute.xlu0 %32 }
  0x85   :  { %v48_v22 = vpop.permute.xlu1 %47 }
  0x87   :  { %v38_v16 = vpop.permute.xlu0 %37 }
  0x8a   :  { %v162_v39 = vpop.permute.xlu1 %161 }
  0x8c   :  { %v158_v38 = vpop.permute.xlu0 %157 }
  0x8e   :  { %v166_v48 = vpop.permute.xlu1 %165 }
  0x90   :  { %v170_v45 = vpop.permute.xlu0 %169 }
  0x93   :  { %v277_v57 = vpop.permute.xlu1 %276 }
  0xdb   :  { %v391_v17 = vpop.f32.mrb[0].mxu0 }
  0xdc   :  { %v135_v18 = vadd.f32 %v391_v17, %v38_v16  ;;  %v129_v19 = vpop.f32.mrb[1].mxu0 }
  0xdd   :  { %v130_v20 = vadd.f32 %v129_v19, %v33_v14 }
  0xde   :  { %v149_v21 = vmax.f32 %v135_v18, 0.0 }
  0xdf   :  { %v148_v23 = vmax.f32 %v130_v20, 0.0  ;;  %v394_v24 = vpop.f32.mrb[2].mxu0 }
  0xe0   :  { %v145_v25 = vadd.f32 %v394_v24, %v48_v22  ;;  %v139_v26 = vpop.f32.mrb[3].mxu0 }
  0xe1   :  { %v140_v27 = vadd.f32 %v139_v26, %v43_v15  ;;  %v424_v28 = vpack.c.bf16 %v149_v21, %v148_v23 }
  0xe2   :  { %v151_v29 = vmax.f32 %v145_v25, 0.0 }
  0xe3   :  { %v150_v30 = vmax.f32 %v140_v27, 0.0  ;;  %425 = vmatprep.subr.bf16.mxu1 %v424_v28 }
  0xe4   :  { %427 = vmatpush3.bf16.msra.mxu1 %v424_v28 }
  0xe5   :  { %v428_v31 = vpack.c.bf16 %v151_v29, %v150_v30 }
  0xe7   :  { %429 = vmatprep.subr.bf16.mxu1 %v428_v31 }
  0xe8   :  { %431 = vmatpush3.bf16.msra.mxu1 %v428_v31 }
  0xeb   :  { %404 = vmatmul.mubr.msk.f32.vlgmr.msra.gmra.mrb[0].mxu1 %vm172_vm1, %v153_v32 }
  0xec   :  { %406 = vmatprep.mubr.msk.f32.mxu1 %vm172_vm1, %v154_v33 }
  0xef   :  { %407 = vmatmul.mubr.msk.f32.gmra.mrb[2].mxu1 %vm172_vm1, %v155_v34 }
 0x1be   :  { %v405_v40 = vpop.f32.mrb[0].mxu1 }
 0x1bf   :  { %v257_v41 = vadd.f32 %v405_v40, %v162_v39  ;;  %v251_v42 = vpop.f32.mrb[1].mxu1 }
 0x1c0   :  { %v252_v43 = vadd.f32 %v251_v42, %v158_v38 }
 0x1c1   :  { %v271_v44 = vmax.f32 %v257_v41, 0.0 }
 0x1c2   :  { %v270_v46 = vmax.f32 %v252_v43, 0.0  ;;  %v408_v47 = vpop.f32.mrb[2].mxu1 }
 0x1c3   :  { %v267_v49 = vadd.f32 %v408_v47, %v170_v45  ;;  %v261_v50 = vpop.f32.mrb[3].mxu1 }
 0x1c4   :  { %v433_v51 = vpack.c.bf16 %v271_v44, %v270_v46  ;;  %v262_v52 = vadd.f32 %v261_v50, %v166_v48 }
 0x1c5   :  { %v273_v53 = vmax.f32 %v267_v49, 0.0 }
 0x1c6   :  { %v272_v54 = vmax.f32 %v262_v52, 0.0  ;;  %434 = vmatpush3.bf16.msra.mxu0 %v433_v51 }
 0x1c7   :  { %435 = vmatprep.subr.bf16.mxu0 %v452_v35 }
 0x1c8   :  { %v436_v55 = vpack.c.bf16 %v273_v53, %v272_v54 }
 0x1ca   :  { %437 = vmatpush3.bf16.msra.mxu0 %v436_v55 }
 0x1cd   :  { %418 = vmatmul.mubr.msk.f32.vlgmr.msra.gmra.mrb[4].mxu0 %vm172_vm1, %v274_v56 }
 0x2a0   :  { %v348_v58 = vpop.f32.mrb[4].mxu0 }
 0x2a1   :  { %v349_v59 = vadd.f32 %v348_v58, %v277_v57  ;;  %v419_v60 = vpop.f32.mrb[5].mxu0 }
 0x2a3   :  { %352 = vst [vmem:[%s548_s5] sm:$0x3] %v349_v59 }

</bundles_post_ra>
